<compile_context>
chip_gen: v6e
topology: v6e:2x2x1
jax: 0.10.0
libtpu: 0.0.40
codegen_flags: <defaults>
</compile_context>

<pallas_src>
import math

import jax
import jax.numpy as jnp
from jax.experimental import pallas as pl
from jax.experimental.pallas import tpu as pltpu

FEATURES = [32, 32, 32]          # SPINNArchitecture.features
ACT = jnp.tanh                   # SPINNArchitecture.activation == "tanh"
N_BRANCH_LAYERS = len(FEATURES)  # per-branch layers: 1 -> f0 -> f1 -> ... -> f_{-1}
NB = 3                           # three coordinate branches (t, x, y)


# ----------------------------------------------------------------------------- kernel
def spinn_kernel(txy_ref, w1_ref, b1_ref, wd_ref, bd_ref,
                 c1w_ref, c1b_ref, c2wa_ref, c2wb_ref, c2b_ref,
                 fw_ref, fb_ref, out_ref):
    F = FEATURES[-1]

    # --- fused first layer on the VPU: per branch, outer product of the (F,1)
    #     weight column with the (1, TILE) coordinate row (K=1 -> no MXU). ---
    chunks = []
    for i in range(NB):
        row = txy_ref[i:i + 1, :]                  # (1, TILE)
        wcol = w1_ref[i * F:(i + 1) * F, :]        # (F, 1)
        bcol = b1_ref[i * F:(i + 1) * F, :]        # (F, 1)
        chunks.append(ACT(wcol * row + bcol))      # (F, TILE)
    h = jnp.concatenate(chunks, axis=0)            # (3F, TILE)  [t_feat; x_feat; y_feat]

    # --- deeper branch layers: block-diagonal (3F,3F) matmuls (branches fused) ---
    for l in range(N_BRANCH_LAYERS - 1):
        h = ACT(jnp.dot(wd_ref[l], h, preferred_element_type=jnp.float32)
                + bd_ref[l])

    # --- combine_layer1 on concat([t_feat, x_feat]) == first 2F sublanes of h ---
    comb = ACT(jnp.dot(c1w_ref[...], h[:2 * F, :],
                       preferred_element_type=jnp.float32) + c1b_ref[...])

    # --- combine_layer2: weight split host-side -> two (F,F) matmuls, no
    #     in-kernel (2F, TILE) concat copy of [comb; y_feat]. ---
    comb = ACT(jnp.dot(c2wa_ref[...], comb, preferred_element_type=jnp.float32)
               + jnp.dot(c2wb_ref[...], h[2 * F:, :],
                         preferred_element_type=jnp.float32)
               + c2b_ref[...])

    # --- final layer (F -> 1) as VPU multiply + sublane (XLU) reduce -> lane-dense row ---
    out_ref[...] = jnp.sum(fw_ref[...] * comb, axis=0, keepdims=True) + fb_ref[...]


# ----------------------------------------------------------------------------- params
def init_params(key, features=FEATURES):
    """Deterministic init mimicking PyTorch Linear default (U(-1/sqrt(fan_in), ...)).

    Returns per-layer (in_features, out_features) weights and (1, out_features)
    biases in the same order the PyTorch module holds them.
    """
    def linear(k, fan_in, fan_out):
        kw, kb = jax.random.split(k)
        bound = 1.0 / math.sqrt(fan_in)
        W = jax.random.uniform(kw, (fan_in, fan_out), jnp.float32, -bound, bound)
        b = jax.random.uniform(kb, (1, fan_out), jnp.float32, -bound, bound)
        return W, b

    params = []
    dims = [1] + list(features)
    n_keys = 3 * (len(dims) - 1) + 3
    keys = list(jax.random.split(key, n_keys))
    ki = 0
    for _branch in range(3):
        for fan_in, fan_out in zip(dims[:-1], dims[1:]):
            W, b = linear(keys[ki], fan_in, fan_out); ki += 1
            params += [W, b]
    F = features[-1]
    for fan_in, fan_out in [(2 * F, F), (2 * F, F), (F, 1)]:
        W, b = linear(keys[ki], fan_in, fan_out); ki += 1
        params += [W, b]
    return params


def _block_diag(blocks):
    rows = sum(b.shape[0] for b in blocks)
    cols = sum(b.shape[1] for b in blocks)
    out = jnp.zeros((rows, cols), blocks[0].dtype)
    r = c = 0
    for b in blocks:
        out = out.at[r:r + b.shape[0], c:c + b.shape[1]].set(b)
        r += b.shape[0]
        c += b.shape[1]
    return out


def pack_params(params):
    """Pack PyTorch-layout params into the kernel's transposed / fused operands."""
    assert all(f == FEATURES[0] for f in FEATURES), "stacked packing assumes uniform width"
    F = FEATURES[-1]
    nb = 2 * N_BRANCH_LAYERS
    branches = [params[i * nb:(i + 1) * nb] for i in range(NB)]

    # First layer: (1,F) weight rows -> stacked (3F,1) columns (VPU outer product).
    w1p = jnp.concatenate([br[0].T for br in branches], axis=0).astype(jnp.float32)
    b1p = jnp.concatenate([br[1].T for br in branches], axis=0).astype(jnp.float32)

    # Deeper branch layers: block-diagonal transposed weights (h_new = W^T @ h).
    wds, bds = [], []
    for l in range(1, N_BRANCH_LAYERS):
        wds.append(_block_diag([br[2 * l].T for br in branches]))              # (3F,3F)
        bds.append(jnp.concatenate([br[2 * l + 1].T for br in branches], 0))   # (3F,1)
    wd = jnp.stack(wds, axis=0).astype(jnp.float32)   # (L-1, 3F, 3F)
    bd = jnp.stack(bds, axis=0).astype(jnp.float32)   # (L-1, 3F, 1)

    c1W, c1b, c2W, c2b, fW, fb = params[3 * nb:]
    c2Wt = c2W.T.astype(jnp.float32)                  # (F, 2F) -> split into halves
    return (w1p, b1p, wd, bd,
            c1W.T.astype(jnp.float32), c1b.T.astype(jnp.float32),   # (F,2F), (F,1)
            c2Wt[:, :F], c2Wt[:, F:], c2b.T.astype(jnp.float32),    # (F,F), (F,F), (F,1)
            fW.astype(jnp.float32), fb.astype(jnp.float32))         # (F,1),  (1,1)


# ----------------------------------------------------------------------------- wrapper
def _round_up(n, m):
    return ((n + m - 1) // m) * m


def spinn_forward(t, x, y, params, *, max_tile=4096):
    """Forward pass; accepts (N,) or (N,1) coordinate arrays, returns (N,)."""
    t = jnp.asarray(t, jnp.float32).reshape(-1)
    x = jnp.asarray(x, jnp.float32).reshape(-1)
    y = jnp.asarray(y, jnp.float32).reshape(-1)
    N = t.shape[0]
    F = FEATURES[-1]

    txy = jnp.stack([t, x, y], axis=0)                 # (3, N) — batch on lanes
    tile = min(_round_up(max_tile, 128), _round_up(N, 128))
    n_pad = _round_up(N, tile)
    if n_pad != N:
        txy = jnp.pad(txy, ((0, 0), (0, n_pad - N)))   # pad tail tile (thrown away)

    ops = pack_params(params)

    def _resident(a):
        nd = a.ndim
        return pl.BlockSpec(a.shape, lambda i, _nd=nd: (0,) * _nd)

    # Advisory cost hint for XLA's scheduler around the custom call.
    flops_per_elem = (2 * 3 * F                          # fused first layer
                      + (N_BRANCH_LAYERS - 1) * 2 * (3 * F) * (3 * F)
                      + 2 * F * (2 * F)                  # combine1
                      + 2 * 2 * F * F                    # combine2 (split)
                      + 2 * F)                           # final projection
    trans_per_elem = 3 * F + (N_BRANCH_LAYERS - 1) * 3 * F + 2 * F
    weight_bytes = sum(int(a.size) * 4 for a in ops)
    cost = pl.CostEstimate(flops=flops_per_elem * n_pad,
                           transcendentals=trans_per_elem * n_pad,
                           bytes_accessed=4 * (3 * n_pad + n_pad) + weight_bytes)

    out = pl.pallas_call(
        spinn_kernel,
        out_shape=jax.ShapeDtypeStruct((1, n_pad), jnp.float32),
        grid=(n_pad // tile,),
        in_specs=[pl.BlockSpec((3, tile), lambda i: (0, i))]
                 + [_resident(a) for a in ops],
        out_specs=pl.BlockSpec((1, tile), lambda i: (0, i)),
        compiler_params=pltpu.CompilerParams(
            dimension_semantics=("parallel",)),   # shards batch tiles across TCs on v7x
        cost_estimate=cost,
    )(txy, *ops)

    return out[0, :N]  # matches PyTorch output.squeeze(-1) -> (N,)


# ----------------------------------------------------------------------------- reference
def spinn_reference(t, x, y, params):
    """Pure-JAX reference of the original (row-major) math for correctness checks."""
    def _ensure_2d(a):
        return a[:, None] if a.ndim == 1 else a
    t = _ensure_2d(jnp.asarray(t, jnp.float32))
    x = _ensure_2d(jnp.asarray(x, jnp.float32))
    y = _ensure_2d(jnp.asarray(y, jnp.float32))
    nb = 2 * N_BRANCH_LAYERS

    def branch(h, ps):
        for i in range(0, len(ps), 2):
            h = ACT(h @ ps[i] + ps[i + 1])
        return h

    tf = branch(t, params[0:nb])
    xf = branch(x, params[nb:2 * nb])
    yf = branch(y, params[2 * nb:3 * nb])
    c1W, c1b, c2W, c2b, fW, fb = params[3 * nb:]
    comb = ACT(jnp.concatenate([tf, xf], axis=1) @ c1W + c1b)
    comb = ACT(jnp.concatenate([comb, yf], axis=1) @ c2W + c2b)
    return (comb @ fW + fb)[:, 0]


# ----------------------------------------------------------------------------- main
if __name__ == "__main__":
    key = jax.random.PRNGKey(0)
    kp, kt, kx, ky = jax.random.split(key, 4)

    params = init_params(kp)

    # Small demo shapes (single tile, grid=1).
    N = 8
    t = jax.random.uniform(kt, (N,), jnp.float32)
    x = jax.random.uniform(kx, (N,), jnp.float32) * 2.0 - 1.0
    y = jax.random.uniform(ky, (N,), jnp.float32) * 2.0 - 1.0

    out = jax.block_until_ready(spinn_forward(t, x, y, params))
    ref = spinn_reference(t, x, y, params)
    assert out.shape == (N,)
    assert jnp.allclose(out, ref, atol=5e-5, rtol=5e-5), (out, ref)

    # Multi-tile + tail-padding path (tile forced to 128 -> grid of 3, last tile padded).
    N2 = 300
    k2t, k2x, k2y = jax.random.split(jax.random.PRNGKey(1), 3)
    t2 = jax.random.uniform(k2t, (N2,), jnp.float32)
    x2 = jax.random.uniform(k2x, (N2,), jnp.float32) * 2.0 - 1.0
    y2 = jax.random.uniform(k2y, (N2,), jnp.float32) * 2.0 - 1.0

    out2 = jax.block_until_ready(spinn_forward(t2, x2, y2, params, max_tile=128))
    ref2 = spinn_reference(t2, x2, y2, params)
    assert out2.shape == (N2,)
    assert jnp.allclose(out2, ref2, atol=5e-5, rtol=5e-5), (out2, ref2)

    print("KERNEL_OK")
</pallas_src>

<mosaic_0001>
module attributes {stable_mosaic.version = 11 : i64} {
  func.func @spinn_kernel(%arg0: i32, %arg1: memref<3x128xf32, #tpu.memory_space<vmem>>, %arg2: memref<96x1xf32, #tpu.memory_space<vmem>>, %arg3: memref<96x1xf32, #tpu.memory_space<vmem>>, %arg4: memref<2x96x96xf32, #tpu.memory_space<vmem>>, %arg5: memref<2x96x1xf32, #tpu.memory_space<vmem>>, %arg6: memref<32x64xf32, #tpu.memory_space<vmem>>, %arg7: memref<32x1xf32, #tpu.memory_space<vmem>>, %arg8: memref<32x32xf32, #tpu.memory_space<vmem>>, %arg9: memref<32x32xf32, #tpu.memory_space<vmem>>, %arg10: memref<32x1xf32, #tpu.memory_space<vmem>>, %arg11: memref<32x1xf32, #tpu.memory_space<vmem>>, %arg12: memref<1x1xf32, #tpu.memory_space<vmem>>, %arg13: memref<1x128xf32, #tpu.memory_space<vmem>>) attributes {dimension_semantics = [#tpu.dimension_semantics<parallel>], iteration_bounds = array<i64: 1>, scalar_prefetch = 0 : i64, scratch_operands = 0 : i64, tpu.core_type = #tpu.core_type<tc>, window_params = [{transform_indices = @transform_0, window_bounds = array<i64: 3, 128>}, {pipeline_mode = #tpu.pipeline_mode<synchronous>, transform_indices = @transform_1, window_bounds = array<i64: 96, 1>}, {pipeline_mode = #tpu.pipeline_mode<synchronous>, transform_indices = @transform_2, window_bounds = array<i64: 96, 1>}, {pipeline_mode = #tpu.pipeline_mode<synchronous>, transform_indices = @transform_3, window_bounds = array<i64: 2, 96, 96>}, {pipeline_mode = #tpu.pipeline_mode<synchronous>, transform_indices = @transform_4, window_bounds = array<i64: 2, 96, 1>}, {pipeline_mode = #tpu.pipeline_mode<synchronous>, transform_indices = @transform_5, window_bounds = array<i64: 32, 64>}, {pipeline_mode = #tpu.pipeline_mode<synchronous>, transform_indices = @transform_6, window_bounds = array<i64: 32, 1>}, {pipeline_mode = #tpu.pipeline_mode<synchronous>, transform_indices = @transform_7, window_bounds = array<i64: 32, 32>}, {pipeline_mode = #tpu.pipeline_mode<synchronous>, transform_indices = @transform_8, window_bounds = array<i64: 32, 32>}, {pipeline_mode = #tpu.pipeline_mode<synchronous>, transform_indices = @transform_9, window_bounds = array<i64: 32, 1>}, {pipeline_mode = #tpu.pipeline_mode<synchronous>, transform_indices = @transform_10, window_bounds = array<i64: 32, 1>}, {pipeline_mode = #tpu.pipeline_mode<synchronous>, transform_indices = @transform_11, window_bounds = array<i64: 1, 1>}, {transform_indices = @transform_12, window_bounds = array<i64: 1, 128>}]} {
    %c0 = arith.constant 0 : index
    %c0_0 = arith.constant 0 : index
    %0 = vector.load %arg1[%c0, %c0_0] : memref<3x128xf32, #tpu.memory_space<vmem>>, vector<1x128xf32>
    %c0_1 = arith.constant 0 : index
    %c0_2 = arith.constant 0 : index
    %1 = vector.load %arg2[%c0_1, %c0_2] : memref<96x1xf32, #tpu.memory_space<vmem>>, vector<32x1xf32>
    %c0_3 = arith.constant 0 : index
    %c0_4 = arith.constant 0 : index
    %2 = vector.load %arg3[%c0_3, %c0_4] : memref<96x1xf32, #tpu.memory_space<vmem>>, vector<32x1xf32>
    %3 = vector.broadcast %1 : vector<32x1xf32> to vector<32x128xf32>
    %4 = vector.broadcast %0 : vector<1x128xf32> to vector<32x128xf32>
    %5 = arith.mulf %3, %4 : vector<32x128xf32>
    %6 = vector.broadcast %2 : vector<32x1xf32> to vector<32x128xf32>
    %7 = arith.addf %5, %6 : vector<32x128xf32>
    %8 = math.tanh %7 : vector<32x128xf32>
    %c1 = arith.constant 1 : index
    %c0_5 = arith.constant 0 : index
    %9 = vector.load %arg1[%c1, %c0_5] : memref<3x128xf32, #tpu.memory_space<vmem>>, vector<1x128xf32>
    %c32 = arith.constant 32 : index
    %c0_6 = arith.constant 0 : index
    %10 = vector.load %arg2[%c32, %c0_6] : memref<96x1xf32, #tpu.memory_space<vmem>>, vector<32x1xf32>
    %c32_7 = arith.constant 32 : index
    %c0_8 = arith.constant 0 : index
    %11 = vector.load %arg3[%c32_7, %c0_8] : memref<96x1xf32, #tpu.memory_space<vmem>>, vector<32x1xf32>
    %12 = vector.broadcast %10 : vector<32x1xf32> to vector<32x128xf32>
    %13 = vector.broadcast %9 : vector<1x128xf32> to vector<32x128xf32>
    %14 = arith.mulf %12, %13 : vector<32x128xf32>
    %15 = vector.broadcast %11 : vector<32x1xf32> to vector<32x128xf32>
    %16 = arith.addf %14, %15 : vector<32x128xf32>
    %17 = math.tanh %16 : vector<32x128xf32>
    %c2 = arith.constant 2 : index
    %c0_9 = arith.constant 0 : index
    %18 = vector.load %arg1[%c2, %c0_9] : memref<3x128xf32, #tpu.memory_space<vmem>>, vector<1x128xf32>
    %c64 = arith.constant 64 : index
    %c0_10 = arith.constant 0 : index
    %19 = vector.load %arg2[%c64, %c0_10] : memref<96x1xf32, #tpu.memory_space<vmem>>, vector<32x1xf32>
    %c64_11 = arith.constant 64 : index
    %c0_12 = arith.constant 0 : index
    %20 = vector.load %arg3[%c64_11, %c0_12] : memref<96x1xf32, #tpu.memory_space<vmem>>, vector<32x1xf32>
    %21 = vector.broadcast %19 : vector<32x1xf32> to vector<32x128xf32>
    %22 = vector.broadcast %18 : vector<1x128xf32> to vector<32x128xf32>
    %23 = arith.mulf %21, %22 : vector<32x128xf32>
    %24 = vector.broadcast %20 : vector<32x1xf32> to vector<32x128xf32>
    %25 = arith.addf %23, %24 : vector<32x128xf32>
    %26 = math.tanh %25 : vector<32x128xf32>
    %27 = tpu.concatenate %8, %17, %26 in 0 : vector<32x128xf32>, vector<32x128xf32>, vector<32x128xf32> -> vector<96x128xf32>
    %c0_13 = arith.constant 0 : index
    %c0_14 = arith.constant 0 : index
    %c0_15 = arith.constant 0 : index
    %28 = vector.load %arg4[%c0_13, %c0_14, %c0_15] : memref<2x96x96xf32, #tpu.memory_space<vmem>>, vector<1x96x96xf32>
    %29 = vector.shape_cast %28 : vector<1x96x96xf32> to vector<96x96xf32>
    %cst = arith.constant dense<0.000000e+00> : vector<96x128xf32>
    %30 = tpu.matmul %29, %27, %cst {dimension_numbers = #tpu.dot_dimension_numbers<[1], [0], [0], [1], [0, 0, 1, 1], [], []>} : vector<96x96xf32>, vector<96x128xf32>, vector<96x128xf32> -> vector<96x128xf32>
    %c0_16 = arith.constant 0 : index
    %c0_17 = arith.constant 0 : index
    %c0_18 = arith.constant 0 : index
    %31 = vector.load %arg5[%c0_16, %c0_17, %c0_18] : memref<2x96x1xf32, #tpu.memory_space<vmem>>, vector<1x96x1xf32>
    %32 = vector.shape_cast %31 : vector<1x96x1xf32> to vector<96x1xf32>
    %33 = vector.broadcast %32 : vector<96x1xf32> to vector<96x128xf32>
    %34 = arith.addf %30, %33 : vector<96x128xf32>
    %35 = math.tanh %34 : vector<96x128xf32>
    %c1_19 = arith.constant 1 : index
    %c0_20 = arith.constant 0 : index
    %c0_21 = arith.constant 0 : index
    %36 = vector.load %arg4[%c1_19, %c0_20, %c0_21] : memref<2x96x96xf32, #tpu.memory_space<vmem>>, vector<1x96x96xf32>
    %37 = vector.shape_cast %36 : vector<1x96x96xf32> to vector<96x96xf32>
    %cst_22 = arith.constant dense<0.000000e+00> : vector<96x128xf32>
    %38 = tpu.matmul %37, %35, %cst_22 {dimension_numbers = #tpu.dot_dimension_numbers<[1], [0], [0], [1], [0, 0, 1, 1], [], []>} : vector<96x96xf32>, vector<96x128xf32>, vector<96x128xf32> -> vector<96x128xf32>
    %c1_23 = arith.constant 1 : index
    %c0_24 = arith.constant 0 : index
    %c0_25 = arith.constant 0 : index
    %39 = vector.load %arg5[%c1_23, %c0_24, %c0_25] : memref<2x96x1xf32, #tpu.memory_space<vmem>>, vector<1x96x1xf32>
    %40 = vector.shape_cast %39 : vector<1x96x1xf32> to vector<96x1xf32>
    %41 = vector.broadcast %40 : vector<96x1xf32> to vector<96x128xf32>
    %42 = arith.addf %38, %41 : vector<96x128xf32>
    %43 = math.tanh %42 : vector<96x128xf32>
    %c0_26 = arith.constant 0 : index
    %c0_27 = arith.constant 0 : index
    %44 = vector.load %arg6[%c0_26, %c0_27] : memref<32x64xf32, #tpu.memory_space<vmem>>, vector<32x64xf32>
    %45 = vector.extract_strided_slice %43 {offsets = [0, 0], sizes = [64, 128], strides = [1, 1]} : vector<96x128xf32> to vector<64x128xf32>
    %cst_28 = arith.constant dense<0.000000e+00> : vector<32x128xf32>
    %46 = tpu.matmul %44, %45, %cst_28 {dimension_numbers = #tpu.dot_dimension_numbers<[1], [0], [0], [1], [0, 0, 1, 1], [], []>} : vector<32x64xf32>, vector<64x128xf32>, vector<32x128xf32> -> vector<32x128xf32>
    %c0_29 = arith.constant 0 : index
    %c0_30 = arith.constant 0 : index
    %47 = vector.load %arg7[%c0_29, %c0_30] : memref<32x1xf32, #tpu.memory_space<vmem>>, vector<32x1xf32>
    %48 = vector.broadcast %47 : vector<32x1xf32> to vector<32x128xf32>
    %49 = arith.addf %46, %48 : vector<32x128xf32>
    %50 = math.tanh %49 : vector<32x128xf32>
    %c0_31 = arith.constant 0 : index
    %c0_32 = arith.constant 0 : index
    %51 = vector.load %arg8[%c0_31, %c0_32] : memref<32x32xf32, #tpu.memory_space<vmem>>, vector<32x32xf32>
    %cst_33 = arith.constant dense<0.000000e+00> : vector<32x128xf32>
    %52 = tpu.matmul %51, %50, %cst_33 {dimension_numbers = #tpu.dot_dimension_numbers<[1], [0], [0], [1], [0, 0, 1, 1], [], []>} : vector<32x32xf32>, vector<32x128xf32>, vector<32x128xf32> -> vector<32x128xf32>
    %c0_34 = arith.constant 0 : index
    %c0_35 = arith.constant 0 : index
    %53 = vector.load %arg9[%c0_34, %c0_35] : memref<32x32xf32, #tpu.memory_space<vmem>>, vector<32x32xf32>
    %54 = vector.extract_strided_slice %43 {offsets = [64, 0], sizes = [32, 128], strides = [1, 1]} : vector<96x128xf32> to vector<32x128xf32>
    %cst_36 = arith.constant dense<0.000000e+00> : vector<32x128xf32>
    %55 = tpu.matmul %53, %54, %cst_36 {dimension_numbers = #tpu.dot_dimension_numbers<[1], [0], [0], [1], [0, 0, 1, 1], [], []>} : vector<32x32xf32>, vector<32x128xf32>, vector<32x128xf32> -> vector<32x128xf32>
    %56 = arith.addf %52, %55 : vector<32x128xf32>
    %c0_37 = arith.constant 0 : index
    %c0_38 = arith.constant 0 : index
    %57 = vector.load %arg10[%c0_37, %c0_38] : memref<32x1xf32, #tpu.memory_space<vmem>>, vector<32x1xf32>
    %58 = vector.broadcast %57 : vector<32x1xf32> to vector<32x128xf32>
    %59 = arith.addf %56, %58 : vector<32x128xf32>
    %60 = math.tanh %59 : vector<32x128xf32>
    %c0_39 = arith.constant 0 : index
    %c0_40 = arith.constant 0 : index
    %61 = vector.load %arg11[%c0_39, %c0_40] : memref<32x1xf32, #tpu.memory_space<vmem>>, vector<32x1xf32>
    %62 = vector.broadcast %61 : vector<32x1xf32> to vector<32x128xf32>
    %63 = arith.mulf %62, %60 : vector<32x128xf32>
    %cst_41 = arith.constant dense<0.000000e+00> : vector<128xf32>
    %64 = vector.multi_reduction <add>, %63, %cst_41 [0] : vector<32x128xf32> to vector<128xf32>
    %65 = vector.shape_cast %64 : vector<128xf32> to vector<1x128xf32>
    %c0_42 = arith.constant 0 : index
    %c0_43 = arith.constant 0 : index
    %66 = vector.load %arg12[%c0_42, %c0_43] : memref<1x1xf32, #tpu.memory_space<vmem>>, vector<1x1xf32>
    %67 = vector.broadcast %66 : vector<1x1xf32> to vector<1x128xf32>
    %68 = arith.addf %65, %67 : vector<1x128xf32>
    %c0_44 = arith.constant 0 : index
    %c0_45 = arith.constant 0 : index
    %69 = vector.load %arg13[%c0_44, %c0_45] : memref<1x128xf32, #tpu.memory_space<vmem>>, vector<1x128xf32>
    tpu.vector_store %arg13[%c0_44, %c0_45], %68 {strides = array<i32>} : memref<1x128xf32, #tpu.memory_space<vmem>>, vector<1x128xf32>,
    return
  }
  func.func @transform_0(%arg0: i32) -> (i32, i32) {
    %c0_i32 = arith.constant 0 : i32
    %c0_i32_0 = arith.constant 0 : i32
    return %c0_i32, %arg0 : i32, i32
  }
  func.func @transform_1(%arg0: i32) -> (i32, i32) {
    %c0_i32 = arith.constant 0 : i32
    %c0_i32_0 = arith.constant 0 : i32
    %c0_i32_1 = arith.constant 0 : i32
    return %c0_i32, %c0_i32_0 : i32, i32
  }
  func.func @transform_2(%arg0: i32) -> (i32, i32) {
    %c0_i32 = arith.constant 0 : i32
    %c0_i32_0 = arith.constant 0 : i32
    %c0_i32_1 = arith.constant 0 : i32
    return %c0_i32, %c0_i32_0 : i32, i32
  }
  func.func @transform_3(%arg0: i32) -> (i32, i32, i32) {
    %c0_i32 = arith.constant 0 : i32
    %c0_i32_0 = arith.constant 0 : i32
    %c0_i32_1 = arith.constant 0 : i32
    %c0_i32_2 = arith.constant 0 : i32
    return %c0_i32, %c0_i32_0, %c0_i32_1 : i32, i32, i32
  }
  func.func @transform_4(%arg0: i32) -> (i32, i32, i32) {
    %c0_i32 = arith.constant 0 : i32
    %c0_i32_0 = arith.constant 0 : i32
    %c0_i32_1 = arith.constant 0 : i32
    %c0_i32_2 = arith.constant 0 : i32
    return %c0_i32, %c0_i32_0, %c0_i32_1 : i32, i32, i32
  }
  func.func @transform_5(%arg0: i32) -> (i32, i32) {
    %c0_i32 = arith.constant 0 : i32
    %c0_i32_0 = arith.constant 0 : i32
    %c0_i32_1 = arith.constant 0 : i32
    return %c0_i32, %c0_i32_0 : i32, i32
  }
  func.func @transform_6(%arg0: i32) -> (i32, i32) {
    %c0_i32 = arith.constant 0 : i32
    %c0_i32_0 = arith.constant 0 : i32
    %c0_i32_1 = arith.constant 0 : i32
    return %c0_i32, %c0_i32_0 : i32, i32
  }
  func.func @transform_7(%arg0: i32) -> (i32, i32) {
    %c0_i32 = arith.constant 0 : i32
    %c0_i32_0 = arith.constant 0 : i32
    %c0_i32_1 = arith.constant 0 : i32
    return %c0_i32, %c0_i32_0 : i32, i32
  }
  func.func @transform_8(%arg0: i32) -> (i32, i32) {
    %c0_i32 = arith.constant 0 : i32
    %c0_i32_0 = arith.constant 0 : i32
    %c0_i32_1 = arith.constant 0 : i32
    return %c0_i32, %c0_i32_0 : i32, i32
  }
  func.func @transform_9(%arg0: i32) -> (i32, i32) {
    %c0_i32 = arith.constant 0 : i32
    %c0_i32_0 = arith.constant 0 : i32
    %c0_i32_1 = arith.constant 0 : i32
    return %c0_i32, %c0_i32_0 : i32, i32
  }
  func.func @transform_10(%arg0: i32) -> (i32, i32) {
    %c0_i32 = arith.constant 0 : i32
    %c0_i32_0 = arith.constant 0 : i32
    %c0_i32_1 = arith.constant 0 : i32
    return %c0_i32, %c0_i32_0 : i32, i32
  }
  func.func @transform_11(%arg0: i32) -> (i32, i32) {
    %c0_i32 = arith.constant 0 : i32
    %c0_i32_0 = arith.constant 0 : i32
    %c0_i32_1 = arith.constant 0 : i32
    return %c0_i32, %c0_i32_0 : i32, i32
  }
  func.func @transform_12(%arg0: i32) -> (i32, i32) {
    %c0_i32 = arith.constant 0 : i32
    %c0_i32_0 = arith.constant 0 : i32
    return %c0_i32, %arg0 : i32, i32
  }
}

</mosaic_0001>

<bundles_post_ra>
// kernel: tpu_custom_call.1
= control target key start
LH: loop header
LB: loop body
LE: loop exit
PB: predicated region body
PF: predicated region fallthrough
CT: control target
= control target key end

     0   :  { %s1985_s0 = inlined_call_operand.vmem [shape: f32[3,128], index: 0, kind: input, shape index: {}]   ;;  %s1986_s1 = inlined_call_operand.vmem [shape: f32[96,1], index: 1, kind: input, shape index: {}]   ;;  %s1987_s2 = inlined_call_operand.vmem [shape: f32[96,1], index: 2, kind: input, shape index: {}]   ;;  %s1988_s3 = inlined_call_operand.vmem [shape: f32[2,96,96], index: 3, kind: input, shape index: {}]   ;;  %s1989_s4 = inlined_call_operand.vmem [shape: f32[2,96,1], index: 4, kind: input, shape index: {}]   ;;  %s1990_s5 = inlined_call_operand.vmem [shape: f32[32,64], index: 5, kind: input, shape index: {}]   ;;  %s1991_s6 = inlined_call_operand.vmem [shape: f32[32,1], index: 6, kind: input, shape index: {}]   ;;  %s1992_s7 = inlined_call_operand.vmem [shape: f32[32,32], index: 7, kind: input, shape index: {}]   ;;  %s1993_s8 = inlined_call_operand.vmem [shape: f32[32,32], index: 8, kind: input, shape index: {}]   ;;  %s1994_s9 = inlined_call_operand.vmem [shape: f32[32,1], index: 9, kind: input, shape index: {}]   ;;  %s1995_s10 = inlined_call_operand.vmem [shape: f32[32,1], index: 10, kind: input, shape index: {}]   ;;  %s1996_s11 = inlined_call_operand.<no memory space> [shape: f32[1,1], index: 11, kind: input, shape index: {}]   ;;  %s1997_s12 = inlined_call_operand.hbm [shape: f32[1,128], index: 12, kind: output, shape index: {}]  }
   0x1   :  { %v17_v0 = vstv %s1996_s11 }
   0x2   :  { %18 = vst [vmem:[#allocation2] sm:$0x1] %v17_v0 }
   0x3   :  { %v182_v1 = vld [vmem:[%s1987_s2 + $0x58] sm:$0xff]  ;;  %v1579_v3 = vmov 0   ;;  %v176_v4 = vld [vmem:[%s1986_s1 + $0x48] sm:$0xff]  ;;  %v177_v5 = vld [vmem:[%s1986_s1 + $0x50] sm:$0xff] }
   0x4   :  { %v178_v2 = vld [vmem:[%s1986_s1 + $0x58] sm:$0xff]  ;;  %1468 = vset.pattern.permute.xlu1 %v1579_v3  ;;  %1467 = vset.pattern.permute.xlu0 %v1579_v3  ;;  %v175_v6 = vld [vmem:[%s1986_s1 + $0x40] sm:$0xff]  ;;  %v181_v7 = vld [vmem:[%s1987_s2 + $0x50] sm:$0xff] }
   0x5   :  { %228 = vperm.xlu1 %1468, %v182_v1   ;;  %200 = vperm.xlu0 %1467, %v178_v2   ;;  %v113_v8 = vld [vmem:[%s1986_s1 + $0x38] sm:$0xff]  ;;  %v180_v9 = vld [vmem:[%s1987_s2 + $0x48] sm:$0xff]  ;;  %v112_v10 = vld [vmem:[%s1986_s1 + $0x30] sm:$0xff] }
   0x6   :  { %v179_v11 = vld [vmem:[%s1987_s2 + $0x40] sm:$0xff]  ;;  %v111_v12 = vld [vmem:[%s1986_s1 + $0x28] sm:$0xff]  ;;  %v117_v13 = vld [vmem:[%s1987_s2 + $0x38] sm:$0xff] }
   0x9   :  { %190 = vperm.xlu1 %1468, %v176_v4   ;;  %195 = vperm.xlu0 %1467, %v177_v5  }
   0xd   :  { %185 = vperm.xlu1 %1468, %v175_v6   ;;  %223 = vperm.xlu0 %1467, %v181_v7  }
  0x11   :  { %135 = vperm.xlu1 %1468, %v113_v8   ;;  %218 = vperm.xlu0 %1467, %v180_v9  }
  0x15   :  { %130 = vperm.xlu1 %1468, %v112_v10   ;;  %213 = vperm.xlu0 %1467, %v179_v11  }
  0x16   :  { %19 = vsyncpa [#allocation4], 0  ;;  %v110_v14 = vld [vmem:[%s1986_s1 + $0x20] sm:$0xff]  ;;  %v116_v15 = vld [vmem:[%s1987_s2 + $0x30] sm:$0xff]  ;;  %vm323_vm0 = vcmask 785408   ;;  %vm784_vm1 = vcmask 523264  }
  0x17   :  { %v115_v16 = vld [vmem:[%s1987_s2 + $0x28] sm:$0xff]  ;;  %v48_v17 = vld [vmem:[%s1986_s1 + $0x18] sm:$0xff]  ;;  %v114_v18 = vld [vmem:[%s1987_s2 + $0x20] sm:$0xff]  ;;  %vm894_vm2 = vcmask 261120  }
  0x18   :  { %v47_v19 = vld [vmem:[%s1986_s1 + $0x10] sm:$0xff]  ;;  %v52_v20 = vld [vmem:[%s1987_s2 + $0x18] sm:$0xff]  ;;  %v46_v21 = vld [vmem:[%s1986_s1 + $0x8] sm:$0xff] }
  0x19   :  { %125 = vperm.xlu1 %1468, %v111_v12   ;;  %163 = vperm.xlu0 %1467, %v117_v13   ;;  %v51_v22 = vld [vmem:[%s1987_s2 + $0x10] sm:$0xff]  ;;  %v45_v23 = vld [vmem:[%s1986_s1] sm:$0xff]  ;;  %v50_v24 = vld [vmem:[%s1987_s2 + $0x8] sm:$0xff] }
  0x1a   :  { %v49_v25 = vld [vmem:[%s1987_s2] sm:$0xff]  ;;  %v262_v26 = vld [vmem:[%s1989_s4 + $0x58] sm:$0xff]  ;;  %v261_v27 = vld [vmem:[%s1989_s4 + $0x50] sm:$0xff] }
  0x1b   :  { %v260_v28 = vld [vmem:[%s1989_s4 + $0x48] sm:$0xff]  ;;  %v259_v29 = vld [vmem:[%s1989_s4 + $0x40] sm:$0xff]  ;;  %v258_v30 = vld [vmem:[%s1989_s4 + $0x38] sm:$0xff] }
  0x1c   :  { %v257_v31 = vld [vmem:[%s1989_s4 + $0x30] sm:$0xff]  ;;  %v256_v32 = vld [vmem:[%s1989_s4 + $0x28] sm:$0xff]  ;;  %v255_v33 = vld [vmem:[%s1989_s4 + $0x20] sm:$0xff] }
  0x1d   :  { %120 = vperm.xlu1 %1468, %v110_v14   ;;  %158 = vperm.xlu0 %1467, %v116_v15   ;;  %v239_v34 = vld [vmem:[%s1988_s3] sm:$0xff]  ;;  %v254_v35 = vld [vmem:[%s1989_s4 + $0x18] sm:$0xff]  ;;  %v253_v36 = vld [vmem:[%s1989_s4 + $0x10] sm:$0xff] }
  0x1e   :  { %1347 = vmatprep.mubr.msk.f32.mxu0 %vm323_vm0, %v239_v34  ;;  %v252_v37 = vld [vmem:[%s1989_s4 + $0x8] sm:$0xff]  ;;  %v251_v38 = vld [vmem:[%s1989_s4] sm:$0xff]  ;;  %v1218_v39 = vld [vmem:[%s1989_s4 + $0x98] sm:$0xff] }
  0x1f   :  { %v1217_v40 = vld [vmem:[%s1989_s4 + $0x90] sm:$0xff]  ;;  %v1216_v41 = vld [vmem:[%s1989_s4 + $0x88] sm:$0xff]  ;;  %v1215_v42 = vld [vmem:[%s1989_s4 + $0x80] sm:$0xff] }
  0x20   :  { %v1214_v43 = vld [vmem:[%s1989_s4 + $0x78] sm:$0xff]  ;;  %v1213_v44 = vld [vmem:[%s1989_s4 + $0x70] sm:$0xff]  ;;  %v1212_v45 = vld [vmem:[%s1989_s4 + $0x68] sm:$0xff] }
  0x21   :  { %153 = vperm.xlu0 %1467, %v115_v16   ;;  %70 = vperm.xlu1 %1468, %v48_v17   ;;  %v1211_v46 = vld [vmem:[%s1989_s4 + $0x60] sm:$0xff]  ;;  %v1222_v47 = vld [vmem:[%s1989_s4 + $0xb8] sm:$0xff]  ;;  %v1221_v48 = vld [vmem:[%s1989_s4 + $0xb0] sm:$0xff] }
  0x22   :  { %v1220_v49 = vld [vmem:[%s1989_s4 + $0xa8] sm:$0xff]  ;;  %v1219_v50 = vld [vmem:[%s1989_s4 + $0xa0] sm:$0xff]  ;;  %v763_v51 = vld [vmem:[%s1991_s6 + $0x18] sm:$0xff] }
  0x23   :  { %v762_v52 = vld [vmem:[%s1991_s6 + $0x10] sm:$0xff]  ;;  %v761_v53 = vld [vmem:[%s1991_s6 + $0x8] sm:$0xff]  ;;  %v760_v54 = vld [vmem:[%s1991_s6] sm:$0xff] }
  0x24   :  { %v1089_v55 = vld [vmem:[%s1994_s9] sm:$0xff]  ;;  %v1090_v56 = vld [vmem:[%s1994_s9 + $0x8] sm:$0xff]  ;;  %v1091_v57 = vld [vmem:[%s1994_s9 + $0x10] sm:$0xff] }
  0x25   :  { %148 = vperm.xlu0 %1467, %v114_v18   ;;  %65 = vperm.xlu1 %1468, %v47_v19   ;;  %v1092_v58 = vld [vmem:[%s1994_s9 + $0x18] sm:$0xff]  ;;  %v1121_v59 = vld [vmem:[%s1995_s10] sm:$0xff]  ;;  %v1122_v60 = vld [vmem:[%s1995_s10 + $0x8] sm:$0xff] }
  0x26   :  { %v1123_v61 = vld [vmem:[%s1995_s10 + $0x10] sm:$0xff]  ;;  %v1124_v62 = vld [vmem:[%s1995_s10 + $0x18] sm:$0xff]  ;;  %v1158_v63 = vld [vmem:[#allocation2] sm:$0x1] }
  0x27   :  { %v1186_v0 = vld [vmem:[%s1985_s0 + $0x2] ss:$0 sm:$0xff]  ;;  %v1185_v16 = vld [vmem:[%s1985_s0 + $0x1] ss:$0 sm:$0xff] }
  0x29   :  { %98 = vperm.xlu0 %1467, %v52_v20   ;;  %60 = vperm.xlu1 %1468, %v46_v21  }
  0x2d   :  { %93 = vperm.xlu0 %1467, %v51_v22   ;;  %55 = vperm.xlu1 %1468, %v45_v23  }
  0x31   :  { %88 = vperm.xlu0 %1467, %v50_v24   ;;  %83 = vperm.xlu1 %1468, %v49_v25  }
  0x35   :  { %320 = vperm.xlu0 %1467, %v262_v26   ;;  %315 = vperm.xlu1 %1468, %v261_v27  }
  0x39   :  { %310 = vperm.xlu0 %1467, %v260_v28   ;;  %305 = vperm.xlu1 %1468, %v259_v29  }
  0x3d   :  { %300 = vperm.xlu0 %1467, %v258_v30   ;;  %295 = vperm.xlu1 %1468, %v257_v31  }
  0x41   :  { %290 = vperm.xlu0 %1467, %v256_v32   ;;  %285 = vperm.xlu1 %1468, %v255_v33  }
  0x45   :  { %280 = vperm.xlu0 %1467, %v254_v35   ;;  %275 = vperm.xlu1 %1468, %v253_v36  }
  0x49   :  { %270 = vperm.xlu0 %1467, %v252_v37   ;;  %265 = vperm.xlu1 %1468, %v251_v38   ;;  %v1184_v37 = vld [vmem:[%s1985_s0] ss:$0 sm:$0xff] }
  0x4d   :  { %560 = vperm.xlu0 %1467, %v1218_v39   ;;  %555 = vperm.xlu1 %1468, %v1217_v40  }
  0x51   :  { %550 = vperm.xlu0 %1467, %v1216_v41   ;;  %545 = vperm.xlu1 %1468, %v1215_v42  }
  0x55   :  { %540 = vperm.xlu0 %1467, %v1214_v43   ;;  %535 = vperm.xlu1 %1468, %v1213_v44  }
  0x59   :  { %530 = vperm.xlu0 %1467, %v1212_v45   ;;  %525 = vperm.xlu1 %1468, %v1211_v46  }
  0x5d   :  { %580 = vperm.xlu0 %1467, %v1222_v47   ;;  %575 = vperm.xlu1 %1468, %v1221_v48  }
  0x61   :  { %570 = vperm.xlu0 %1467, %v1220_v49   ;;  %565 = vperm.xlu1 %1468, %v1219_v50  }
  0x65   :  { %781 = vperm.xlu0 %1467, %v763_v51   ;;  %776 = vperm.xlu1 %1468, %v762_v52  }
  0x69   :  { %771 = vperm.xlu0 %1467, %v761_v53   ;;  %766 = vperm.xlu1 %1468, %v760_v54  }
  0x6d   :  { %1095 = vperm.xlu0 %1467, %v1089_v55   ;;  %1100 = vperm.xlu1 %1468, %v1090_v56  }
  0x71   :  { %1105 = vperm.xlu0 %1467, %v1091_v57   ;;  %1110 = vperm.xlu1 %1468, %v1092_v58  }
  0x75   :  { %1127 = vperm.xlu0 %1467, %v1121_v59   ;;  %1132 = vperm.xlu1 %1468, %v1122_v60  }
  0x79   :  { %1137 = vperm.xlu0 %1467, %v1123_v61   ;;  %1142 = vperm.xlu1 %1468, %v1124_v62  }
  0x7d   :  { %1161 = vperm.xlu0 %1467, %v1158_v63   ;;  %v240_v63 = vld [vmem:[%s1988_s3 + $0x8] sm:$0xff] }
  0x80   :  { %v229_v1 = vpop.permute.xlu1 %228  ;;  %v201_v2 = vpop.permute.xlu0 %200 }
  0x81   :  { %v210_v3 = vmul.f32 %v1186_v0, %v201_v2  ;;  %v243_v2 = vld [vmem:[%s1988_s3 + $0x20] sm:$0xff] }
  0x83   :  { %v234_v4 = vadd.f32 %v229_v1, %v210_v3  ;;  %v242_v1 = vld [vmem:[%s1988_s3 + $0x18] sm:$0xff]  ;;  %v244_v3 = vld [vmem:[%s1988_s3 + $0x28] sm:$0xff] }
  0x84   :  { %v191_v5 = vpop.permute.xlu1 %190  ;;  %v196_v6 = vpop.permute.xlu0 %195 }
  0x85   :  { %1469 = vtanh.f32 %v234_v4  ;;  %v209_v7 = vmul.f32 %v1186_v0, %v196_v6  ;;  %v208_v11 = vmul.f32 %v1186_v0, %v191_v5  ;;  %v245_v4 = vld [vmem:[%s1988_s3 + $0x30] sm:$0xff]  ;;  %v246_v5 = vld [vmem:[%s1988_s3 + $0x38] sm:$0xff]  ;;  %v247_v6 = vld [vmem:[%s1988_s3 + $0x40] sm:$0xff] }
  0x88   :  { %v186_v8 = vpop.permute.xlu1 %185  ;;  %v224_v9 = vpop.permute.xlu0 %223 }
  0x89   :  { %v233_v10 = vadd.f32 %v224_v9, %v209_v7  ;;  %v207_v15 = vmul.f32 %v1186_v0, %v186_v8  ;;  %v241_v0 = vld [vmem:[%s1988_s3 + $0x10] sm:$0xff]  ;;  %v248_v7 = vld [vmem:[%s1988_s3 + $0x48] sm:$0xff]  ;;  %v250_v9 = vld [vmem:[%s1988_s3 + $0x58] sm:$0xff] }
  0x8a   :  { %v249_v8 = vld [vmem:[%s1988_s3 + $0x50] sm:$0xff] }
  0x8b   :  { %1471 = vtanh.f32 %v233_v10  ;;  %v1199_v10 = vld [vmem:[%s1988_s3 + $0x60] sm:$0xff] }
  0x8c   :  { %v136_v12 = vpop.permute.xlu1 %135  ;;  %v219_v13 = vpop.permute.xlu0 %218  ;;  %1389 = vmatprep.mubr.msk.f32.mxu1 %vm323_vm0, %v1199_v10 }
  0x8d   :  { %v232_v14 = vadd.f32 %v219_v13, %v208_v11  ;;  %v145_v21 = vmul.f32 %v1185_v16, %v136_v12 }
  0x8f   :  { %1473 = vtanh.f32 %v232_v14 }
  0x90   :  { %v131_v17 = vpop.permute.xlu1 %130  ;;  %v214_v18 = vpop.permute.xlu0 %213 }
  0x91   :  { %v231_v19 = vadd.f32 %v214_v18, %v207_v15  ;;  %v144_v25 = vmul.f32 %v1185_v16, %v131_v17 }
  0x92   :  { %v1470_v20 = vpop.eup %1469 }
  0x93   :  { %1475 = vtanh.f32 %v231_v19  ;;  %1323 = vmatprep.subr.mxu0 %v1470_v20 }
  0x94   :  { %v126_v22 = vpop.permute.xlu1 %125  ;;  %1324 = vmatpush3.msra.mxu0 %v1470_v20  ;;  %v164_v23 = vpop.permute.xlu0 %163 }
  0x95   :  { %v169_v24 = vadd.f32 %v164_v23, %v145_v21  ;;  %v143_v30 = vmul.f32 %v1185_v16, %v126_v22 }
  0x97   :  { %1477 = vtanh.f32 %v169_v24 }
  0x98   :  { %v1472_v26 = vpop.eup %1471  ;;  %v121_v27 = vpop.permute.xlu1 %120 }
  0x99   :  { %v159_v28 = vpop.permute.xlu0 %158  ;;  %1325 = vmatprep.subr.mxu0 %v1472_v26  ;;  %v142_v35 = vmul.f32 %v1185_v16, %v121_v27 }
  0x9a   :  { %v168_v29 = vadd.f32 %v159_v28, %v144_v25  ;;  %1326 = vmatpush3.msra.mxu0 %v1472_v26 }
  0x9c   :  { %1479 = vtanh.f32 %v168_v29  ;;  %v1474_v31 = vpop.eup %1473  ;;  %v71_v33 = vpop.permute.xlu1 %70 }
  0x9d   :  { %v154_v32 = vpop.permute.xlu0 %153  ;;  %1327 = vmatprep.subr.mxu0 %v1474_v31  ;;  %v80_v41 = vmul.f32 %v1184_v37, %v71_v33 }
  0x9e   :  { %v167_v34 = vadd.f32 %v154_v32, %v143_v30  ;;  %1328 = vmatpush3.msra.mxu0 %v1474_v31 }
  0xa0   :  { %1481 = vtanh.f32 %v167_v34  ;;  %v1476_v36 = vpop.eup %1475  ;;  %v66_v39 = vpop.permute.xlu1 %65 }
  0xa1   :  { %v149_v38 = vpop.permute.xlu0 %148  ;;  %1329 = vmatprep.subr.mxu0 %v1476_v36  ;;  %v79_v46 = vmul.f32 %v1184_v37, %v66_v39 }
  0xa2   :  { %v166_v40 = vadd.f32 %v149_v38, %v142_v35  ;;  %1330 = vmatpush3.msra.mxu0 %v1476_v36 }
  0xa4   :  { %1483 = vtanh.f32 %v166_v40  ;;  %v1478_v42 = vpop.eup %1477  ;;  %v61_v44 = vpop.permute.xlu1 %60 }
  0xa5   :  { %v99_v43 = vpop.permute.xlu0 %98  ;;  %1331 = vmatprep.subr.mxu0 %v1478_v42  ;;  %v78_v51 = vmul.f32 %v1184_v37, %v61_v44 }
  0xa6   :  { %v104_v45 = vadd.f32 %v99_v43, %v80_v41  ;;  %1332 = vmatpush3.msra.mxu0 %v1478_v42 }
  0xa8   :  { %1485 = vtanh.f32 %v104_v45  ;;  %v56_v49 = vpop.permute.xlu1 %55 }
  0xa9   :  { %v1480_v47 = vpop.eup %1479  ;;  %v94_v48 = vpop.permute.xlu0 %93  ;;  %v77_v52 = vmul.f32 %v1184_v37, %v56_v49 }
  0xaa   :  { %v103_v50 = vadd.f32 %v94_v48, %v79_v46  ;;  %1333 = vmatprep.subr.mxu0 %v1480_v47 }
  0xab   :  { %1334 = vmatpush3.msra.mxu0 %v1480_v47 }
  0xac   :  { %1487 = vtanh.f32 %v103_v50  ;;  %v84_v55 = vpop.permute.xlu1 %83 }
  0xad   :  { %v1482_v53 = vpop.eup %1481  ;;  %v89_v54 = vpop.permute.xlu0 %88  ;;  %v101_v57 = vadd.f32 %v84_v55, %v77_v52 }
  0xae   :  { %v102_v56 = vadd.f32 %v89_v54, %v78_v51  ;;  %1335 = vmatprep.subr.mxu0 %v1482_v53 }
  0xaf   :  { %1336 = vmatpush3.msra.mxu0 %v1482_v53 }
  0xb0   :  { %1489 = vtanh.f32 %v102_v56  ;;  %v316_v17 = vpop.permute.xlu1 %315 }
  0xb1   :  { %v1484_v58 = vpop.eup %1483  ;;  %1491 = vtanh.f32 %v101_v57  ;;  %v321_v15 = vpop.permute.xlu0 %320 }
  0xb2   :  { %1337 = vmatprep.subr.mxu0 %v1484_v58 }
  0xb3   :  { %1338 = vmatpush3.msra.mxu0 %v1484_v58 }
  0xb4   :  { %v306_v22 = vpop.permute.xlu1 %305 }
  0xb5   :  { %v1486_v59 = vpop.eup %1485  ;;  %v311_v20 = vpop.permute.xlu0 %310 }
  0xb6   :  { %1339 = vmatprep.subr.mxu0 %v1486_v59 }
  0xb7   :  { %1340 = vmatpush3.msra.mxu0 %v1486_v59  ;;  %v1200_v59 = vld [vmem:[%s1988_s3 + $0x68] sm:$0xff] }
  0xb8   :  { %v296_v28 = vpop.permute.xlu1 %295 }
  0xb9   :  { %v1488_v60 = vpop.eup %1487  ;;  %v301_v25 = vpop.permute.xlu0 %300 }
  0xba   :  { %1341 = vmatprep.subr.mxu0 %v1488_v60 }
  0xbb   :  { %1342 = vmatpush3.msra.mxu0 %v1488_v60  ;;  %v1201_v60 = vld [vmem:[%s1988_s3 + $0x70] sm:$0xff] }
  0xbc   :  { %v286_v35 = vpop.permute.xlu1 %285 }
  0xbd   :  { %v1490_v61 = vpop.eup %1489  ;;  %v291_v33 = vpop.permute.xlu0 %290 }
  0xbe   :  { %1343 = vmatprep.subr.mxu0 %v1490_v61  ;;  %v1492_v62 = vpop.eup %1491 }
  0xbf   :  { %1344 = vmatpush3.msra.mxu0 %v1490_v61  ;;  %v1202_v61 = vld [vmem:[%s1988_s3 + $0x78] sm:$0xff] }
  0xc0   :  { %1345 = vmatprep.subr.mxu0 %v1492_v62  ;;  %v276_v40 = vpop.permute.xlu1 %275 }
  0xc1   :  { %1346 = vmatpush3.msra.mxu0 %v1492_v62  ;;  %v281_v38 = vpop.permute.xlu0 %280  ;;  %v1203_v62 = vld [vmem:[%s1988_s3 + $0x80] sm:$0xff] }
  0xc2   :  { %1348 = vmatmul.mubr.msk.f32.vlgmr.msra.gmra.mxu0 %vm323_vm0, %v240_v63  ;;  %v1204_v63 = vld [vmem:[%s1988_s3 + $0x88] sm:$0xff] }
  0xc3   :  { %1350 = vmatprep.mubr.msk.f32.mxu0 %vm323_vm0, %v241_v0  ;;  %v1205_v0 = vld [vmem:[%s1988_s3 + $0x90] sm:$0xff] }
  0xc4   :  { %v266_v48 = vpop.permute.xlu1 %265 }
  0xc5   :  { %v271_v45 = vpop.permute.xlu0 %270 }
  0xc6   :  { %1351 = vmatmul.mubr.msk.f32.gmra.mxu0 %vm323_vm0, %v242_v1  ;;  %v1206_v1 = vld [vmem:[%s1988_s3 + $0x98] sm:$0xff] }
  0xc7   :  { %1353 = vmatprep.mubr.msk.f32.mxu0 %vm323_vm0, %v243_v2  ;;  %v1207_v2 = vld [vmem:[%s1988_s3 + $0xa0] sm:$0xff] }
  0xca   :  { %1354 = vmatmul.mubr.msk.f32.gmra.mxu0 %vm323_vm0, %v244_v3  ;;  %v1208_v3 = vld [vmem:[%s1988_s3 + $0xa8] sm:$0xff] }
  0xcb   :  { %1356 = vmatprep.mubr.msk.f32.mxu0 %vm323_vm0, %v245_v4  ;;  %v1209_v4 = vld [vmem:[%s1988_s3 + $0xb0] sm:$0xff] }
  0xce   :  { %1357 = vmatmul.mubr.msk.f32.gmra.mxu0 %vm323_vm0, %v246_v5  ;;  %v1210_v5 = vld [vmem:[%s1988_s3 + $0xb8] sm:$0xff] }
  0xcf   :  { %1359 = vmatprep.mubr.msk.f32.mxu0 %vm323_vm0, %v247_v6  ;;  %v756_v6 = vld [vmem:[%s1990_s5] sm:$0xff] }
  0xd2   :  { %1360 = vmatmul.mubr.msk.f32.gmra.mxu0 %vm323_vm0, %v248_v7  ;;  %v561_v7 = vpop.permute.xlu0 %560 }
  0xd3   :  { %1362 = vmatprep.mubr.msk.f32.mxu0 %vm323_vm0, %v249_v8  ;;  %v556_v8 = vpop.permute.xlu1 %555 }
  0xd6   :  { %1363 = vmatmul.mubr.msk.f32.gmra.mxu0 %vm323_vm0, %v250_v9  ;;  %v551_v9 = vpop.permute.xlu0 %550 }
  0xd7   :  { %1423 = vmatprep.mubr.msk.f32.mxu0 %vm784_vm1, %v756_v6  ;;  %v546_v10 = vpop.permute.xlu1 %545 }
 0x182   :  { %v1349_v11 = vpop.f32.mrf.mxu0 }
 0x183   :  { %v432_v46 = vadd.f32 %v1349_v11, %v271_v45 }
 0x184   :  { %v426_v12 = vpop.f32.mrf.mxu0 }
 0x185   :  { %v427_v49 = vadd.f32 %v426_v12, %v266_v48 }
 0x186   :  { %v1352_v13 = vpop.f32.mrf.mxu0 }
 0x187   :  { %v442_v41 = vadd.f32 %v1352_v13, %v281_v38  ;;  %v541_v13 = vpop.permute.xlu0 %540 }
 0x188   :  { %v436_v14 = vpop.f32.mrf.mxu0 }
 0x189   :  { %v437_v43 = vadd.f32 %v436_v14, %v276_v40 }
 0x18a   :  { %v1355_v16 = vpop.f32.mrf.mxu0 }
 0x18b   :  { %v452_v37 = vadd.f32 %v1355_v16, %v291_v33 }
 0x18c   :  { %v446_v18 = vpop.f32.mrf.mxu0 }
 0x18d   :  { %v447_v39 = vadd.f32 %v446_v18, %v286_v35  ;;  %v531_v18 = vpop.permute.xlu0 %530 }
 0x18e   :  { %v1358_v19 = vpop.f32.mrf.mxu0 }
 0x18f   :  { %v462_v34 = vadd.f32 %v1358_v19, %v301_v25 }
 0x190   :  { %v456_v21 = vpop.f32.mrf.mxu0 }
 0x191   :  { %v457_v36 = vadd.f32 %v456_v21, %v296_v28 }
 0x192   :  { %v1361_v23 = vpop.f32.mrf.mxu0 }
 0x193   :  { %v472_v30 = vadd.f32 %v1361_v23, %v311_v20 }
 0x194   :  { %v466_v24 = vpop.f32.mrf.mxu0 }
 0x195   :  { %v467_v32 = vadd.f32 %v466_v24, %v306_v22 }
 0x196   :  { %v1364_v26 = vpop.f32.mrf.mxu0 }
 0x197   :  { %v482_v27 = vadd.f32 %v1364_v26, %v321_v15  ;;  %v536_v15 = vpop.permute.xlu1 %535  ;;  %v581_v26 = vpop.permute.xlu0 %580 }
 0x198   :  { %v476_v29 = vpop.f32.mrf.mxu0 }
 0x199   :  { %1493 = vtanh.f32 %v482_v27  ;;  %v477_v31 = vadd.f32 %v476_v29, %v316_v17 }
 0x19b   :  { %1495 = vtanh.f32 %v477_v31  ;;  %v526_v20 = vpop.permute.xlu1 %525  ;;  %v571_v35 = vpop.permute.xlu0 %570 }
 0x19c   :  { %1497 = vtanh.f32 %v472_v30 }
 0x19d   :  { %1499 = vtanh.f32 %v467_v32 }
 0x19e   :  { %1501 = vtanh.f32 %v462_v34 }
 0x19f   :  { %1503 = vtanh.f32 %v457_v36  ;;  %v576_v29 = vpop.permute.xlu1 %575 }
 0x1a0   :  { %1505 = vtanh.f32 %v452_v37 }
 0x1a1   :  { %1507 = vtanh.f32 %v447_v39 }
 0x1a2   :  { %1509 = vtanh.f32 %v442_v41 }
 0x1a3   :  { %1511 = vtanh.f32 %v437_v43  ;;  %v566_v40 = vpop.permute.xlu1 %565 }
 0x1a4   :  { %1513 = vtanh.f32 %v432_v46 }
 0x1a5   :  { %1515 = vtanh.f32 %v427_v49 }
 0x1a6   :  { %v1494_v42 = vpop.eup %1493 }
 0x1a7   :  { %1365 = vmatprep.subr.mxu1 %v1494_v42 }
 0x1a8   :  { %v1496_v44 = vpop.eup %1495  ;;  %1366 = vmatpush3.msra.mxu1 %v1494_v42 }
 0x1a9   :  { %1367 = vmatprep.subr.mxu1 %v1496_v44  ;;  %v1498_v47 = vpop.eup %1497 }
 0x1aa   :  { %1368 = vmatpush3.msra.mxu1 %v1496_v44  ;;  %v1500_v50 = vpop.eup %1499 }
 0x1ab   :  { %1369 = vmatprep.subr.mxu1 %v1498_v47  ;;  %v1502_v51 = vpop.eup %1501 }
 0x1ac   :  { %1370 = vmatpush3.msra.mxu1 %v1498_v47  ;;  %v1504_v52 = vpop.eup %1503 }
 0x1ad   :  { %1371 = vmatprep.subr.mxu1 %v1500_v50  ;;  %v1506_v53 = vpop.eup %1505 }
 0x1ae   :  { %1372 = vmatpush3.msra.mxu1 %v1500_v50  ;;  %v1508_v54 = vpop.eup %1507 }
 0x1af   :  { %1373 = vmatprep.subr.mxu1 %v1502_v51  ;;  %v1510_v55 = vpop.eup %1509 }
 0x1b0   :  { %1374 = vmatpush3.msra.mxu1 %v1502_v51  ;;  %v1512_v56 = vpop.eup %1511 }
 0x1b1   :  { %1375 = vmatprep.subr.mxu1 %v1504_v52  ;;  %v1514_v57 = vpop.eup %1513 }
 0x1b2   :  { %1376 = vmatpush3.msra.mxu1 %v1504_v52  ;;  %v1516_v58 = vpop.eup %1515 }
 0x1b3   :  { %1377 = vmatprep.subr.mxu1 %v1506_v53 }
 0x1b4   :  { %1378 = vmatpush3.msra.mxu1 %v1506_v53 }
 0x1b5   :  { %1379 = vmatprep.subr.mxu1 %v1508_v54 }
 0x1b6   :  { %1380 = vmatpush3.msra.mxu1 %v1508_v54 }
 0x1b7   :  { %1381 = vmatprep.subr.mxu1 %v1510_v55 }
 0x1b8   :  { %1382 = vmatpush3.msra.mxu1 %v1510_v55  ;;  %v757_v55 = vld [vmem:[%s1990_s5 + $0x8] sm:$0xff] }
 0x1b9   :  { %1383 = vmatprep.subr.mxu1 %v1512_v56 }
 0x1ba   :  { %1384 = vmatpush3.msra.mxu1 %v1512_v56  ;;  %v758_v56 = vld [vmem:[%s1990_s5 + $0x10] sm:$0xff] }
 0x1bb   :  { %1385 = vmatprep.subr.mxu1 %v1514_v57 }
 0x1bc   :  { %1386 = vmatpush3.msra.mxu1 %v1514_v57  ;;  %v759_v57 = vld [vmem:[%s1990_s5 + $0x18] sm:$0xff] }
 0x1bd   :  { %1387 = vmatprep.subr.mxu1 %v1516_v58 }
 0x1be   :  { %1388 = vmatpush3.msra.mxu1 %v1516_v58  ;;  %v890_v58 = vld [vmem:[%s1993_s8] sm:$0xff] }
 0x1bf   :  { %1390 = vmatmul.mubr.msk.f32.vlgmr.msra.gmra.mxu1 %vm323_vm0, %v1200_v59  ;;  %v891_v59 = vld [vmem:[%s1993_s8 + $0x8] sm:$0xff] }
 0x1c0   :  { %1392 = vmatprep.mubr.msk.f32.mxu1 %vm323_vm0, %v1201_v60  ;;  %v892_v60 = vld [vmem:[%s1993_s8 + $0x10] sm:$0xff] }
 0x1c3   :  { %1393 = vmatmul.mubr.msk.f32.gmra.mxu1 %vm323_vm0, %v1202_v61  ;;  %v893_v61 = vld [vmem:[%s1993_s8 + $0x18] sm:$0xff] }
 0x1c4   :  { %1395 = vmatprep.mubr.msk.f32.mxu1 %vm323_vm0, %v1203_v62  ;;  %v886_v62 = vld [vmem:[%s1992_s7] sm:$0xff] }
 0x1c7   :  { %1396 = vmatmul.mubr.msk.f32.gmra.mxu1 %vm323_vm0, %v1204_v63  ;;  %v888_v63 = vld [vmem:[%s1992_s7 + $0x10] sm:$0xff] }
 0x1c8   :  { %1398 = vmatprep.mubr.msk.f32.mxu1 %vm323_vm0, %v1205_v0  ;;  %v782_v0 = vpop.permute.xlu0 %781 }
 0x1cb   :  { %1399 = vmatmul.mubr.msk.f32.gmra.mxu1 %vm323_vm0, %v1206_v1 }
 0x1cc   :  { %1401 = vmatprep.mubr.msk.f32.mxu1 %vm323_vm0, %v1207_v2  ;;  %v777_v2 = vpop.permute.xlu1 %776  ;;  %v772_v6 = vpop.permute.xlu0 %771 }
 0x1cf   :  { %1402 = vmatmul.mubr.msk.f32.gmra.mxu1 %vm323_vm0, %v1208_v3 }
 0x1d0   :  { %1404 = vmatprep.mubr.msk.f32.mxu1 %vm323_vm0, %v1209_v4 }
 0x1d3   :  { %1405 = vmatmul.mubr.msk.f32.gmra.mxu1 %vm323_vm0, %v1210_v5 }
 0x1d4   :  { %1437 = vmatprep.mubr.msk.f32.mxu1 %vm894_vm2, %v890_v58 }
 0x27f   :  { %v1391_v11 = vpop.f32.mrf.mxu1 }
 0x280   :  { %v691_v36 = vadd.f32 %v1391_v11, %v531_v18 }
 0x281   :  { %v685_v12 = vpop.f32.mrf.mxu1 }
 0x282   :  { %v686_v41 = vadd.f32 %v685_v12, %v526_v20 }
 0x283   :  { %v1394_v14 = vpop.f32.mrf.mxu1 }
 0x284   :  { %v701_v30 = vadd.f32 %v1394_v14, %v541_v13 }
 0x285   :  { %v695_v16 = vpop.f32.mrf.mxu1 }
 0x286   :  { %v696_v32 = vadd.f32 %v695_v16, %v536_v15  ;;  %v887_v16 = vld [vmem:[%s1992_s7 + $0x8] sm:$0xff] }
 0x287   :  { %v1397_v17 = vpop.f32.mrf.mxu1 }
 0x288   :  { %v711_v24 = vadd.f32 %v1397_v17, %v551_v9  ;;  %v889_v17 = vld [vmem:[%s1992_s7 + $0x18] sm:$0xff]  ;;  %s1580_s7 = smov [#allocation3]  }
 0x289   :  { %v705_v19 = vpop.f32.mrf.mxu1  ;;  %s1176_s1 = sshll.u32 %s1580_s7, 4  ;;  %s1177_s1 = int_to_ptr.vmem [resolvable:$true] %s1176_s1 }
 0x28a   :  { %v706_v28 = vadd.f32 %v705_v19, %v546_v10  ;;  %v767_v10 = vpop.permute.xlu1 %766  ;;  %s1557_s18 = scalar_lea.vmem %s1177_s1, 16  ;;  %s1561_s19 = scalar_lea.vmem %s1177_s1, 32 }
 0x28b   :  { %v1400_v21 = vpop.f32.mrf.mxu1  ;;  %p1558_p0 = scmp.ne.s32.totalorder %s1177_s1, %s1557_s18  ;;  %p1562_p1 = scmp.lt.s32.totalorder %s1177_s1, %s1177_s1 }
 0x28c   :  { %v721_v22 = vadd.f32 %v1400_v21, %v561_v7  ;;  %p1563_p2 = scmp.lt.s32.totalorder %s1561_s19, %s1557_s18 }
 0x28d   :  { %v715_v23 = vpop.f32.mrf.mxu1 }
 0x28e   :  { %1517 = vtanh.f32 %v721_v22  ;;  %v716_v25 = vadd.f32 %v715_v23, %v556_v8  ;;  %v1096_v22 = vpop.permute.xlu0 %1095  ;;  %v1101_v23 = vpop.permute.xlu1 %1100  ;;  %p1564_p3 = por %p1563_p2, %p1562_p1 }
 0x28f   :  { %v1403_v27 = vpop.f32.mrf.mxu1 }
 0x290   :  { %1519 = vtanh.f32 %v716_v25  ;;  %v731_v38 = vadd.f32 %v1403_v27, %v571_v35  ;;  %p1565_p4 = pnand %p1564_p3, %p1558_p0 }
 0x291   :  { %v725_v31 = vpop.f32.mrf.mxu1  ;;  %1521 = vtanh.f32 %v711_v24 }
 0x292   :  { %1523 = vtanh.f32 %v706_v28  ;;  %v726_v42 = vadd.f32 %v725_v31, %v566_v40 }
 0x293   :  { %v1406_v33 = vpop.f32.mrf.mxu1  ;;  %1525 = vtanh.f32 %v701_v30 }
 0x294   :  { %v741_v34 = vadd.f32 %v1406_v33, %v581_v26  ;;  %v1106_v33 = vpop.permute.xlu0 %1105 }
 0x295   :  { %v735_v37 = vpop.f32.mrf.mxu1 }
 0x296   :  { %1527 = vtanh.f32 %v741_v34  ;;  %v736_v39 = vadd.f32 %v735_v37, %v576_v29  ;;  %v1111_v34 = vpop.permute.xlu1 %1110 }
 0x297   :  { %1529 = vtanh.f32 %v696_v32 }
 0x298   :  { %1531 = vtanh.f32 %v736_v39 }
 0x299   :  { %1533 = vtanh.f32 %v691_v36 }
 0x29a   :  { %1535 = vtanh.f32 %v731_v38  ;;  %v1128_v38 = vpop.permute.xlu0 %1127  ;;  %v1133_v40 = vpop.permute.xlu1 %1132 }
 0x29b   :  { %v1518_v43 = vpop.eup %1517  ;;  %1537 = vtanh.f32 %v686_v41 }
 0x29c   :  { %1539 = vtanh.f32 %v726_v42  ;;  %1407 = vmatprep.subr.mxu0 %v1518_v43 }
 0x29d   :  { %v1520_v44 = vpop.eup %1519  ;;  %1408 = vmatpush3.msra.mxu0 %v1518_v43 }
 0x29e   :  { %1409 = vmatprep.subr.mxu0 %v1520_v44  ;;  %v1522_v45 = vpop.eup %1521 }
 0x29f   :  { %1410 = vmatpush3.msra.mxu0 %v1520_v44  ;;  %v1524_v46 = vpop.eup %1523 }
 0x2a0   :  { %1411 = vmatprep.subr.mxu0 %v1522_v45  ;;  %v1526_v47 = vpop.eup %1525 }
 0x2a1   :  { %1412 = vmatpush3.msra.mxu0 %v1522_v45 }
 0x2a2   :  { %1413 = vmatprep.subr.mxu0 %v1524_v46 }
 0x2a3   :  { %v1528_v48 = vpop.eup %1527  ;;  %1414 = vmatpush3.msra.mxu0 %v1524_v46  ;;  %v1138_v46 = vpop.permute.xlu0 %1137 }
 0x2a4   :  { %v1530_v49 = vpop.eup %1529  ;;  %1415 = vmatprep.subr.mxu0 %v1526_v47  ;;  %1429 = vmatprep.subr.mxu1 %v1528_v48 }
 0x2a5   :  { %v1532_v50 = vpop.eup %1531  ;;  %1416 = vmatpush3.msra.mxu0 %v1526_v47  ;;  %1430 = vmatpush3.msra.mxu1 %v1528_v48 }
 0x2a6   :  { %v1534_v51 = vpop.eup %1533  ;;  %1417 = vmatprep.subr.mxu0 %v1530_v49  ;;  %1431 = vmatprep.subr.mxu1 %v1532_v50 }
 0x2a7   :  { %v1536_v52 = vpop.eup %1535  ;;  %1418 = vmatpush3.msra.mxu0 %v1530_v49  ;;  %1432 = vmatpush3.msra.mxu1 %v1532_v50  ;;  %v1143_v49 = vpop.permute.xlu1 %1142 }
 0x2a8   :  { %v1538_v53 = vpop.eup %1537  ;;  %1419 = vmatprep.subr.mxu0 %v1534_v51  ;;  %1433 = vmatprep.subr.mxu1 %v1536_v52 }
 0x2a9   :  { %v1540_v54 = vpop.eup %1539  ;;  %1420 = vmatpush3.msra.mxu0 %v1534_v51  ;;  %1434 = vmatpush3.msra.mxu1 %v1536_v52  ;;  %v1164_v52 = vlaneseq }
 0x2aa   :  { %1421 = vmatprep.subr.mxu0 %v1538_v53  ;;  %1435 = vmatprep.subr.mxu1 %v1540_v54 }
 0x2ab   :  { %1422 = vmatpush3.msra.mxu0 %v1538_v53  ;;  %1436 = vmatpush3.msra.mxu1 %v1540_v54 }
 0x2ac   :  { %1424 = vmatmul.mubr.msk.f32.vlgmr.msra.gmra.mxu0 %vm784_vm1, %v757_v55  ;;  %1438 = vmatmul.mubr.msk.f32.vlgmr.msra.gmra.mxu1 %vm894_vm2, %v891_v59  ;;  %v1165_v55 = vshrl.u32 %v1164_v52, 7 }
 0x2ad   :  { %1426 = vmatprep.mubr.msk.f32.mxu0 %vm784_vm1, %v758_v56  ;;  %1440 = vmatprep.mubr.msk.f32.mxu1 %vm894_vm2, %v892_v60  ;;  %v1162_v60 = vpop.permute.xlu0 %1161 }
 0x2ae   :  { %v1166_v58 = vsub.s32 0, %v1165_v55 }
 0x2b0   :  { %1427 = vmatmul.mubr.msk.f32.gmra.mxu0 %vm784_vm1, %v759_v57  ;;  %1441 = vmatmul.mubr.msk.f32.gmra.mxu1 %vm894_vm2, %v893_v61 }
 0x2b1   :  { %1451 = vmatprep.mubr.msk.f32.mxu0 %vm894_vm2, %v886_v62  ;;  %1454 = vmatprep.mubr.msk.f32.mxu1 %vm894_vm2, %v888_v63  ;;  %v1167_v62 = vrot.slane %v1162_v60, %v1166_v58 }
 0x36c   :  { %v1425_v1 = vpop.f32.mrf.mxu0  ;;  %v1439_v18 = vpop.f32.mrf.mxu1 }
 0x36d   :  { %v869_v8 = vadd.f32 %v1425_v1, %v772_v6 }
 0x36e   :  { %v863_v3 = vpop.f32.mrf.mxu0  ;;  %v973_v19 = vpop.f32.mrf.mxu1 }
 0x36f   :  { %v864_v11 = vadd.f32 %v863_v3, %v767_v10 }
 0x370   :  { %v1428_v4 = vpop.f32.mrf.mxu0  ;;  %v1442_v20 = vpop.f32.mrf.mxu1 }
 0x371   :  { %v879_v5 = vadd.f32 %v1428_v4, %v782_v0 }
 0x372   :  { %v873_v7 = vpop.f32.mrf.mxu0  ;;  %v983_v21 = vpop.f32.mrf.mxu1 }
 0x373   :  { %1541 = vtanh.f32 %v879_v5  ;;  %v874_v9 = vadd.f32 %v873_v7, %v777_v2 }
 0x375   :  { %1543 = vtanh.f32 %v874_v9 }
 0x376   :  { %1545 = vtanh.f32 %v869_v8 }
 0x377   :  { %1547 = vtanh.f32 %v864_v11 }
 0x380   :  { %v1542_v12 = vpop.eup %1541 }
 0x381   :  { %1443 = vmatprep.subr.mxu0 %v1542_v12  ;;  %1457 = vmatprep.subr.mxu1 %v1542_v12 }
 0x382   :  { %v1544_v13 = vpop.eup %1543  ;;  %1444 = vmatpush3.msra.mxu0 %v1542_v12  ;;  %1461 = vmatpush3.msra.mxu1 %v1542_v12 }
 0x383   :  { %1445 = vmatprep.subr.mxu0 %v1544_v13  ;;  %1458 = vmatprep.subr.mxu1 %v1544_v13  ;;  %v1546_v14 = vpop.eup %1545 }
 0x384   :  { %1446 = vmatpush3.msra.mxu0 %v1544_v13  ;;  %1462 = vmatpush3.msra.mxu1 %v1544_v13  ;;  %v1548_v15 = vpop.eup %1547 }
 0x385   :  { %1447 = vmatprep.subr.mxu0 %v1546_v14  ;;  %1459 = vmatprep.subr.mxu1 %v1546_v14 }
 0x386   :  { %1448 = vmatpush3.msra.mxu0 %v1546_v14  ;;  %1463 = vmatpush3.msra.mxu1 %v1546_v14 }
 0x387   :  { %1449 = vmatprep.subr.mxu0 %v1548_v15  ;;  %1460 = vmatprep.subr.mxu1 %v1548_v15 }
 0x388   :  { %1450 = vmatpush3.msra.mxu0 %v1548_v15  ;;  %1464 = vmatpush3.msra.mxu1 %v1548_v15 }
 0x389   :  { %1452 = vmatmul.mubr.msk.f32.vlgmr.msra.gmra.mxu0 %vm894_vm2, %v887_v16  ;;  %1455 = vmatmul.mubr.msk.f32.vlgmr.msra.gmra.mxu1 %vm894_vm2, %v889_v17 }
 0x449   :  { %v1453_v24 = vpop.f32.mrf.mxu0  ;;  %v1456_v25 = vpop.f32.mrf.mxu1 }
 0x44a   :  { %v1076_v26 = vadd.f32 %v1453_v24, %v1439_v18  ;;  %v1086_v27 = vadd.f32 %v1456_v25, %v1442_v20 }
 0x44b   :  { %v1070_v28 = vpop.f32.mrf.mxu0  ;;  %v1080_v29 = vpop.f32.mrf.mxu1 }
 0x44c   :  { %v1114_v30 = vadd.f32 %v1101_v23, %v1076_v26  ;;  %v1071_v31 = vadd.f32 %v1070_v28, %v973_v19  ;;  %v1081_v32 = vadd.f32 %v1080_v29, %v983_v21  ;;  %v1116_v35 = vadd.f32 %v1111_v34, %v1086_v27 }
 0x44e   :  { %1549 = vtanh.f32 %v1114_v30  ;;  %v1113_v36 = vadd.f32 %v1096_v22, %v1071_v31  ;;  %v1115_v37 = vadd.f32 %v1106_v33, %v1081_v32 }
 0x450   :  { %1551 = vtanh.f32 %v1113_v36 }
 0x451   :  { %1553 = vtanh.f32 %v1115_v37 }
 0x452   :  { %1555 = vtanh.f32 %v1116_v35 }
 0x45b   :  { %v1550_v39 = vpop.eup %1549 }
 0x45c   :  { %v1146_v44 = vmul.f32 %v1550_v39, %v1133_v40 }
 0x45d   :  { %v1552_v41 = vpop.eup %1551 }
 0x45e   :  { %v1554_v42 = vpop.eup %1553  ;;  %v1145_v43 = vmul.f32 %v1552_v41, %v1128_v38 }
 0x45f   :  { %v1556_v45 = vpop.eup %1555  ;;  %v1147_v47 = vmul.f32 %v1554_v42, %v1138_v46 }
 0x460   :  { %v1149_v48 = vadd.f32 %v1146_v44, %v1145_v43  ;;  %v1148_v50 = vmul.f32 %v1556_v45, %v1143_v49 }
 0x462   :  { %v1150_v51 = vadd.f32 %v1149_v48, %v1147_v47 }
 0x464   :  { %v1151_v53 = vadd.f32 %v1150_v51, %v1148_v50 }
 0x466   :  { %v1152_v54 = vrot.slane %v1151_v53, 4 }
 0x468   :  { %v1153_v56 = vadd.f32 %v1152_v54, %v1151_v53 }
 0x46a   :  { %v1154_v57 = vrot.slane %v1153_v56, 2 }
 0x46c   :  { %v1155_v59 = vadd.f32 %v1154_v57, %v1153_v56 }
 0x46e   :  { %v1156_v61 = vrot.slane %v1155_v59, 1 }
 0x470   :  { %v1157_v63 = vadd.f32 %v1156_v61, %v1155_v59 }
 0x472   :  { %v1168_v0 = vadd.f32 %v1167_v62, %v1157_v63 }
 0x474   :  { %1169 = vst [vmem:[#allocation3] sm:$0x1] %v1168_v0 }
 0x475   :  { %1568 = shalt.err (!%p1565_p4)
}
 0x476   :  { %1179 = dma.vmem_to_hbm [thread:$0]  %s1177_s1, 16, %s1997_s12, [#allocation4]  }
 0x477   :  { %1577 = dma.done.wait [#allocation4], 16  }
 0x478   :  { %1578 = vsyncadd [#allocation4], 4294967280 }
 0x479   :  { %1183 = vsyncpa [#allocation4], 1 }

</bundles_post_ra>
